<compile_context>
chip_gen: v5e
topology: v5e:2x2
jax: 0.10.0
libtpu: 0.0.40
codegen_flags: <defaults>
</compile_context>

<pallas_src>
import math

import jax
import jax.numpy as jnp
from jax import lax
from jax.experimental import pallas as pl
from jax.experimental.pallas import tpu as pltpu


def _gelu_exact(x):
    # nn.GELU() default: exact erf formulation, kept in f32.
    return 0.5 * x * (1.0 + lax.erf(x * (1.0 / math.sqrt(2.0))))


def mlp_kernel(x_ref, w1_ref, b1_ref, w2_ref, b2_ref, o_ref):
    x = x_ref[...]                                            # (tm, INp) compute dtype
    h = jnp.dot(x, w1_ref[...], preferred_element_type=jnp.float32)
    h = h + b1_ref[...]                                       # f32 bias, broadcast (1, Hp)
    h = _gelu_exact(h)                                        # f32 epilogue
    o = jnp.dot(h.astype(w2_ref.dtype), w2_ref[...],
                preferred_element_type=jnp.float32)
    o = o + b2_ref[...]                                       # f32 bias, broadcast (1, Op)
    # Dropout with p=0.0 is the identity.
    o_ref[...] = o.astype(o_ref.dtype)


def _round_up(x, m):
    return (x + m - 1) // m * m


def _pad2(a, rows, cols):
    pr, pc = rows - a.shape[0], cols - a.shape[1]
    if pr or pc:
        a = jnp.pad(a, ((0, pr), (0, pc)))
    return a


def _pick_tm(m_rows, sublane=16):
    """Largest 16-row-aligned tile giving >=4 (else >=2) grid steps."""
    ladder = (512, 256, 128, 64, 32, 16)
    for min_steps in (4, 2):
        for tm in ladder:
            if tm % sublane == 0 and m_rows >= min_steps * tm:
                return tm
    return sublane


def mlp_forward(x, w1, b1, w2, b2, *, compute_dtype=jnp.bfloat16, tm=None):
    """x: (..., IN). w1: (IN, H), b1: (H,), w2: (H, O), b2: (O,)."""
    orig_shape = x.shape
    IN = orig_shape[-1]
    H = w1.shape[1]
    O = w2.shape[1]
    x2 = x.reshape(-1, IN)
    M = x2.shape[0]

    LANE = 128
    INp = _round_up(IN, LANE)
    Hp = _round_up(H, LANE)
    Op = _round_up(O, LANE)

    if tm is None:
        tm = _pick_tm(M)
    # Pad rows so the grid has at least 2 steps (pipelining + v7x megacore).
    Mp = _round_up(max(M, 2 * tm), tm)
    grid = (Mp // tm,)

    cbytes = jnp.dtype(compute_dtype).itemsize

    # Lane-dense, zero-padded operands (zeros do not change the math:
    # padded hidden columns give GELU(0)=0 and meet zero rows of w2).
    x_p = _pad2(x2, Mp, INp).astype(compute_dtype)
    w1_p = _pad2(w1, INp, Hp).astype(compute_dtype)
    w2_p = _pad2(w2, Hp, Op).astype(compute_dtype)
    b1_p = _pad2(b1.reshape(1, H), 1, Hp).astype(jnp.float32)
    b2_p = _pad2(b2.reshape(1, O), 1, Op).astype(jnp.float32)

    # VMEM budget: double-buffered x/out tiles + (double-buffered) resident
    # weights + f32 intermediates; 2x headroom, capped at v7x physical 64 MiB.
    vmem_est = (2 * tm * INp * cbytes
                + 2 * tm * Op * 4
                + 2 * (INp * Hp + Hp * Op) * cbytes
                + 2 * (Hp + Op) * 4
                + tm * Hp * 4 + tm * Op * 4)
    vmem_limit = int(min(max(2 * vmem_est, 32 * 1024 * 1024), 64 * 1024 * 1024))

    cost = pl.CostEstimate(
        flops=2 * Mp * Hp * (INp + Op),
        transcendentals=Mp * Hp,
        bytes_accessed=(Mp * INp + INp * Hp + Hp * Op) * cbytes
                       + (Hp + Op) * 4 + Mp * Op * 4,
    )

    out = pl.pallas_call(
        mlp_kernel,
        out_shape=jax.ShapeDtypeStruct((Mp, Op), jnp.float32),
        grid_spec=pltpu.PrefetchScalarGridSpec(
            num_scalar_prefetch=0,
            grid=grid,
            in_specs=[
                pl.BlockSpec((tm, INp), lambda i: (i, 0)),   # x row-block
                pl.BlockSpec((INp, Hp), lambda i: (0, 0)),   # w1 (resident)
                pl.BlockSpec((1, Hp), lambda i: (0, 0)),     # b1
                pl.BlockSpec((Hp, Op), lambda i: (0, 0)),    # w2 (resident)
                pl.BlockSpec((1, Op), lambda i: (0, 0)),     # b2
            ],
            out_specs=pl.BlockSpec((tm, Op), lambda i: (i, 0)),
        ),
        compiler_params=pltpu.CompilerParams(
            dimension_semantics=("parallel",),
            vmem_limit_bytes=vmem_limit,
        ),
        cost_estimate=cost,
    )(x_p, w1_p, b1_p, w2_p, b2_p)

    out = out[:M, :O]
    return out.reshape(*orig_shape[:-1], O)


def reference_mlp(x, w1, b1, w2, b2):
    h = x @ w1 + b1
    h = 0.5 * h * (1.0 + lax.erf(h / jnp.sqrt(2.0)))
    return h @ w2 + b2


if __name__ == "__main__":
    # Small shapes consistent with the module: batch=2, seq=8,
    # in_features=32, hidden_features=64, out_features=32.
    batch, seq = 2, 8
    in_features, hidden_features, out_features = 32, 64, 32

    key = jax.random.PRNGKey(0)
    kx, k1, k2, k3, k4 = jax.random.split(key, 5)

    x = jax.random.normal(kx, (batch, seq, in_features), dtype=jnp.float32)

    # PyTorch nn.Linear default init bounds (deterministic here).
    bound1 = 1.0 / math.sqrt(in_features)
    w1 = jax.random.uniform(k1, (in_features, hidden_features),
                            minval=-bound1, maxval=bound1, dtype=jnp.float32)
    b1 = jax.random.uniform(k2, (hidden_features,),
                            minval=-bound1, maxval=bound1, dtype=jnp.float32)
    bound2 = 1.0 / math.sqrt(hidden_features)
    w2 = jax.random.uniform(k3, (hidden_features, out_features),
                            minval=-bound2, maxval=bound2, dtype=jnp.float32)
    b2 = jax.random.uniform(k4, (out_features,),
                            minval=-bound2, maxval=bound2, dtype=jnp.float32)

    ref = reference_mlp(x, w1, b1, w2, b2)

    # Exact-semantics path (f32 MXU inputs): tight tolerance.
    out_f32 = jax.block_until_ready(
        mlp_forward(x, w1, b1, w2, b2, compute_dtype=jnp.float32))
    assert out_f32.shape == (batch, seq, out_features)
    assert jnp.allclose(out_f32, ref, atol=1e-5, rtol=1e-5), "f32 mismatch vs reference"

    # Fast path (default): bf16 MXU inputs, f32 accumulation -> looser tolerance.
    out_bf16 = jax.block_until_ready(mlp_forward(x, w1, b1, w2, b2))
    assert out_bf16.shape == (batch, seq, out_features)
    assert jnp.allclose(out_bf16, ref, atol=3e-2, rtol=3e-2), "bf16 mismatch vs reference"

    print("KERNEL_OK")
</pallas_src>

<mosaic_0001>
module attributes {stable_mosaic.version = 11 : i64} {
  func.func @mlp_kernel(%arg0: i32, %arg1: memref<16x128xf32, #tpu.memory_space<vmem>>, %arg2: memref<128x128xf32, #tpu.memory_space<vmem>>, %arg3: memref<1x128xf32, #tpu.memory_space<vmem>>, %arg4: memref<128x128xf32, #tpu.memory_space<vmem>>, %arg5: memref<1x128xf32, #tpu.memory_space<vmem>>, %arg6: memref<16x128xf32, #tpu.memory_space<vmem>>) attributes {dimension_semantics = [#tpu.dimension_semantics<parallel>], iteration_bounds = array<i64: 2>, scalar_prefetch = 0 : i64, scratch_operands = 0 : i64, tpu.core_type = #tpu.core_type<tc>, window_params = [{transform_indices = @transform_0, window_bounds = array<i64: 16, 128>}, {pipeline_mode = #tpu.pipeline_mode<synchronous>, transform_indices = @transform_1, window_bounds = array<i64: 128, 128>}, {pipeline_mode = #tpu.pipeline_mode<synchronous>, transform_indices = @transform_2, window_bounds = array<i64: 1, 128>}, {pipeline_mode = #tpu.pipeline_mode<synchronous>, transform_indices = @transform_3, window_bounds = array<i64: 128, 128>}, {pipeline_mode = #tpu.pipeline_mode<synchronous>, transform_indices = @transform_4, window_bounds = array<i64: 1, 128>}, {transform_indices = @transform_5, window_bounds = array<i64: 16, 128>}]} {
    %c0 = arith.constant 0 : index
    %c0_0 = arith.constant 0 : index
    %0 = vector.load %arg1[%c0, %c0_0] : memref<16x128xf32, #tpu.memory_space<vmem>>, vector<16x128xf32>
    %c0_1 = arith.constant 0 : index
    %c0_2 = arith.constant 0 : index
    %1 = vector.load %arg2[%c0_1, %c0_2] : memref<128x128xf32, #tpu.memory_space<vmem>>, vector<128x128xf32>
    %cst = arith.constant dense<0.000000e+00> : vector<16x128xf32>
    %2 = tpu.matmul %0, %1, %cst {dimension_numbers = #tpu.dot_dimension_numbers<[1], [0], [0], [1], [0, 0, 1, 1], [], []>} : vector<16x128xf32>, vector<128x128xf32>, vector<16x128xf32> -> vector<16x128xf32>
    %c0_3 = arith.constant 0 : index
    %c0_4 = arith.constant 0 : index
    %3 = vector.load %arg3[%c0_3, %c0_4] : memref<1x128xf32, #tpu.memory_space<vmem>>, vector<1x128xf32>
    %4 = vector.broadcast %3 : vector<1x128xf32> to vector<16x128xf32>
    %5 = arith.addf %2, %4 : vector<16x128xf32>
    %cst_5 = arith.constant 5.000000e-01 : f32
    %6 = vector.broadcast %cst_5 : f32 to vector<16x128xf32>
    %7 = arith.mulf %6, %5 : vector<16x128xf32>
    %cst_6 = arith.constant 0.707106769 : f32
    %8 = vector.broadcast %cst_6 : f32 to vector<16x128xf32>
    %9 = arith.mulf %5, %8 : vector<16x128xf32>
    %10 = math.erf %9 : vector<16x128xf32>
    %cst_7 = arith.constant 1.000000e+00 : f32
    %11 = vector.broadcast %cst_7 : f32 to vector<16x128xf32>
    %12 = arith.addf %11, %10 : vector<16x128xf32>
    %13 = arith.mulf %7, %12 : vector<16x128xf32>
    %c0_8 = arith.constant 0 : index
    %c0_9 = arith.constant 0 : index
    %14 = vector.load %arg4[%c0_8, %c0_9] : memref<128x128xf32, #tpu.memory_space<vmem>>, vector<128x128xf32>
    %cst_10 = arith.constant dense<0.000000e+00> : vector<16x128xf32>
    %15 = tpu.matmul %13, %14, %cst_10 {dimension_numbers = #tpu.dot_dimension_numbers<[1], [0], [0], [1], [0, 0, 1, 1], [], []>} : vector<16x128xf32>, vector<128x128xf32>, vector<16x128xf32> -> vector<16x128xf32>
    %c0_11 = arith.constant 0 : index
    %c0_12 = arith.constant 0 : index
    %16 = vector.load %arg5[%c0_11, %c0_12] : memref<1x128xf32, #tpu.memory_space<vmem>>, vector<1x128xf32>
    %17 = vector.broadcast %16 : vector<1x128xf32> to vector<16x128xf32>
    %18 = arith.addf %15, %17 : vector<16x128xf32>
    %c0_13 = arith.constant 0 : index
    %c0_14 = arith.constant 0 : index
    %19 = vector.load %arg6[%c0_13, %c0_14] : memref<16x128xf32, #tpu.memory_space<vmem>>, vector<16x128xf32>
    tpu.vector_store %arg6[%c0_13, %c0_14], %18 {strides = array<i32>} : memref<16x128xf32, #tpu.memory_space<vmem>>, vector<16x128xf32>,
    return
  }
  func.func @transform_0(%arg0: i32) -> (i32, i32) {
    %c0_i32 = arith.constant 0 : i32
    %c0_i32_0 = arith.constant 0 : i32
    return %arg0, %c0_i32 : i32, i32
  }
  func.func @transform_1(%arg0: i32) -> (i32, i32) {
    %c0_i32 = arith.constant 0 : i32
    %c0_i32_0 = arith.constant 0 : i32
    %c0_i32_1 = arith.constant 0 : i32
    return %c0_i32, %c0_i32_0 : i32, i32
  }
  func.func @transform_2(%arg0: i32) -> (i32, i32) {
    %c0_i32 = arith.constant 0 : i32
    %c0_i32_0 = arith.constant 0 : i32
    %c0_i32_1 = arith.constant 0 : i32
    return %c0_i32, %c0_i32_0 : i32, i32
  }
  func.func @transform_3(%arg0: i32) -> (i32, i32) {
    %c0_i32 = arith.constant 0 : i32
    %c0_i32_0 = arith.constant 0 : i32
    %c0_i32_1 = arith.constant 0 : i32
    return %c0_i32, %c0_i32_0 : i32, i32
  }
  func.func @transform_4(%arg0: i32) -> (i32, i32) {
    %c0_i32 = arith.constant 0 : i32
    %c0_i32_0 = arith.constant 0 : i32
    %c0_i32_1 = arith.constant 0 : i32
    return %c0_i32, %c0_i32_0 : i32, i32
  }
  func.func @transform_5(%arg0: i32) -> (i32, i32) {
    %c0_i32 = arith.constant 0 : i32
    %c0_i32_0 = arith.constant 0 : i32
    return %arg0, %c0_i32 : i32, i32
  }
}

</mosaic_0001>

<bundles_post_ra>
// kernel: tpu_custom_call.1
= control target key start
LH: loop header
LB: loop body
LE: loop exit
PB: predicated region body
PF: predicated region fallthrough
CT: control target
= control target key end

     0   :  { %10 = vsyncpa [#allocation3], 0  ;;  %s1089_s0 = inlined_call_operand.hbm [shape: f32[32,128], index: 0, kind: input, shape index: {}]   ;;  %s1090_s1 = inlined_call_operand.hbm [shape: f32[128,128], index: 1, kind: input, shape index: {}]   ;;  %s1091_s2 = inlined_call_operand.vmem [shape: f32[1,128], index: 2, kind: input, shape index: {}]   ;;  %s1092_s3 = inlined_call_operand.hbm [shape: f32[128,128], index: 3, kind: input, shape index: {}]   ;;  %s1093_s4 = inlined_call_operand.vmem [shape: f32[1,128], index: 4, kind: input, shape index: {}]   ;;  %s1094_s5 = inlined_call_operand.hbm [shape: f32[32,128], index: 5, kind: output, shape index: {}]  }
   0x1   :  { %12 = vsyncpa [#allocation3 + $0x1], 0 }
   0x2   :  { %13 = vsyncpa [#allocation6], 0 }
   0x3   :  { %14 = vsyncpa [#allocation4], 0 }
   0x4   :  { %16 = vsyncpa [#allocation4 + $0x1], 0  ;;  %s895_s18 = smov 0   ;;  %s897_s19 = smov 0  }
   0x5   :  { %s899_s20 = smov 0   ;;  %s901_s21 = smov 0  }
   0x6 LB: > { %s916_s22 = sadd.s32 4294967295, %s857_s21   ;;  %s566_s23 = sadd.s32 4294967294, %s857_s21   ;;  %s857_s21 = sphi %s901_s21, %s1106_s21   ;;  %s853_s20 = sphi %s899_s20, %s1105_s20   ;;  %s849_s19 = sphi %s897_s19, %s1104_s19   ;;  %s845_s18 = sphi %s895_s18, %s1103_s18  }
   0x7   : > { %p42_p0 = scmp.ne.s32.totalorder %s849_s19, %s845_s18  ;;  %p43_p1 = scmp.eq.s32.totalorder %s916_s22, 0 }
   0x8   : > { %p150_p2 = scmp.eq.s32.totalorder %s916_s22, 1  ;;  %p156_p3 = scmp.eq.s32.totalorder %s566_s23, 1 }
   0x9   : > { %p925_p4 = por %p43_p1, %p42_p0  ;;  %p567_p5 = scmp.ge.s32.totalorder %s857_s21, 1 }
   0xa   : > { %p930_p6 = por %p156_p3, %p42_p0  ;;  %p163_p7 = scmp.lt.s32.totalorder %s857_s21, 3 }
   0xb   : > { %s174_s28 = sshll.u32 %s1090_s1, 4  ;;  %s859_s30 = smov [#allocation5]   ;;  %s175_s28 = int_to_ptr.hbm [resolvable:$true] %s174_s28 }
   0xc   : > { %p938_p8 = pnand %p567_p5, %p163_p7  ;;  %s176_s6 = sshll.u32 %s859_s30, 4  ;;  %s177_s6 = int_to_ptr.vmem [resolvable:$true] %s176_s6 }
   0xd   : > { %s191_s9 = sshll.u32 %s1092_s3, 4  ;;  %s1095_s10 = smov 128   ;;  %s192_s9 = int_to_ptr.hbm [resolvable:$true] %s191_s9 }
   0xe   : > { %p632_p9 = pneg %p938_p8  ;;  %s861_s11 = smov 8  }
   0xf   : > { %s862_s12 = smov [#allocation7]   ;;  %s957_s14 = sadd.s32 1, %s857_s21  }
  0x10   : > { %p633_p10 = pnand %p632_p9, %p43_p1  ;;  %s193_s13 = sshll.u32 %s862_s12, 4  ;;  %s194_s13 = int_to_ptr.vmem [resolvable:$true] %s193_s13 }
  0x11   : > { %s29_s15 = sadd.s32 1, %s853_s20  ;;  %s26_s16 = ssub.s32 %s857_s21, %s957_s14 }
  0x12   : > { %635 = dma.hbm_to_vmem [thread:$0]  (!%p633_p10), %s175_s28, 2048, %s177_s6, [#allocation6], %s1095_s10, %s1095_s10, %s861_s11  }
  0x13   : > { %638 = dma.hbm_to_vmem [thread:$0]  (!%p633_p10), %s192_s9, 2048, %s194_s13, [#allocation6], %s1095_s10, %s1095_s10, %s861_s11  }
  0x14   : > { %p36_p12 = scmp.ne.s32.totalorder %s853_s20, %s849_s19  ;;  %p27_p13 = scmp.eq.s32.totalorder %s26_s16, 0 }
  0x15   : > { %p37_p0 = scmp.eq.s32.totalorder %s857_s21, 0  ;;  %p649_p5 = scmp.lt.s32.totalorder %s857_s21, 2 }
  0x16   : > { %p967_p3 = por %p150_p2, %p36_p12  ;;  %s210_s26 = sand.u32 1, %s853_s20  }
  0x17   : > { %s973_s23 = scalar_select %p27_p13, %s853_s20, %s29_s15  }
  0x18   : > { %p38_p7 = por %p37_p0, %p36_p12  ;;  %s571_s27 = sshll.u32 %s210_s26, 4 }
  0x19   : > { %s586_s28 = sshll.u32 %s857_s21, 4  ;;  %s214_s8 = scalar_lea.vmem [#allocation2], %s571_s27 }
  0x1a   : > { %s219_s7 = scalar_lea.hbm %s1089_s0, %s586_s28  ;;  %s222_s9 = sshll.u32 %s214_s8, 4  ;;  %s223_s9 = int_to_ptr.vmem [resolvable:$true] %s222_s9 }
  0x1b   : > { %s220_s12 = sshll.u32 %s219_s7, 4  ;;  %p980_p2 = pnand %p649_p5, %p38_p7  ;;  %s221_s12 = int_to_ptr.hbm [resolvable:$true] %s220_s12 }
  0x1c   : > { %s211_s15 = scalar_lea.sflag [#allocation3], %s210_s26  ;;  %s757_s16 = sshra.s32 %s221_s12, 4  ;;  %s758_s16 = int_to_ptr.hbm [resolvable:$true] %s757_s16 }
  0x1d   : > { %s759_s10 = scalar_lea.hbm %s758_s16, 16  ;;  %p761_p10 = pneg %p980_p2 }
  0x1e   : > { %p760_p9 = scmp.ne.s32.totalorder %s758_s16, %s759_s10  ;;  %s764_s30 = scalar_lea.hbm %s1089_s0, 32 }
  0x1f   : > { %p765_p0 = scmp.lt.s32.totalorder %s758_s16, %s1089_s0  ;;  %p766_p5 = scmp.lt.s32.totalorder %s764_s30, %s759_s10 }
  0x20   : > { %p762_p12 = pnand %p761_p10, %p760_p9 }
  0x21   : > { %p767_p7 = por %p766_p5, %p765_p0 }
  0x22   : > { %p763_p13 = pneg %p762_p12 }
  0x24   : > { %p768_p11 = pnand %p767_p7, %p763_p13 }
  0x26   : > { %771 = shalt.err (!%p768_p11)
}
  0x27   : > { %s1101_s26 = smov 128   ;;  %234 = sbr.rel (%p938_p8) target bundleno = 402 (0x192), region = 40 }
  0x28   : > { %642 = dma.hbm_to_vmem [thread:$0]  (!%p980_p2), %s221_s12, 256, %s223_s9, %s211_s15, %s1101_s26, %s1101_s26, %s861_s11  }
  0x29   : > { %s1000_s8 = sand.u32 (!%p938_p8), 1, %s849_s19  }
  0x2a   : > { %s575_s10 = sshll.u32 (!%p938_p8), %s1000_s8, 4  ;;  %s237_s16 = scalar_lea.sflag (!%p938_p8), [#allocation3], %s1000_s8 }
  0x2b   : > { %s1006_s28 = scalar_lea.vmem (!%p938_p8), [#allocation2], %s575_s10 }
  0x2c   : > { %832 = dma.done.wait (%p925_p4), %s237_s16, 256  }
  0x2d   : > { %834 = vsyncadd (%p925_p4), %s237_s16, 4294967040 }
  0x2e   : > { %836 = dma.done.wait (%p43_p1), [#allocation6], 4096  }
  0x2f   : > { %838 = vsyncadd (%p43_p1), [#allocation6], 4294963200  ;;  %v297_v0 = vld [vmem:[#allocation5 + $0x78] sm:$0xff]  ;;  %v296_v1 = vld [vmem:[#allocation5 + $0x70] sm:$0xff]  ;;  %s587_s12 = sshll.u32 %s916_s22, 4  ;;  %s277_s13 = scalar_lea.vmem [#allocation8], %s575_s10 }
  0x30   : > { %302 = vmatpush.msra.mxu0 %v297_v0  ;;  %588 = vmatpush.msra.mxu2 %v297_v0  ;;  %v295_v2 = vld [vmem:[#allocation5 + $0x68] sm:$0xff]  ;;  %v294_v3 = vld [vmem:[#allocation5 + $0x60] sm:$0xff]  ;;  %v293_v4 = vld [vmem:[#allocation5 + $0x58] sm:$0xff]  ;;  %s470_s30 = scalar_lea.hbm %s1094_s5, %s587_s12  ;;  %s471_s6 = sshll.u32 %s277_s13, 4  ;;  %s472_s6 = int_to_ptr.vmem [resolvable:$true] %s471_s6 }
  0x31   : > { %v292_v5 = vld [vmem:[#allocation5 + $0x50] sm:$0xff]  ;;  %v291_v6 = vld [vmem:[#allocation5 + $0x48] sm:$0xff]  ;;  %v290_v7 = vld [vmem:[#allocation5 + $0x40] sm:$0xff]  ;;  %s473_s7 = sshll.u32 %s470_s30, 4  ;;  %s459_s26 = scalar_lea.sflag [#allocation4], %s1000_s8  ;;  %s474_s7 = int_to_ptr.hbm [resolvable:$true] %s473_s7 }
  0x32   : > { %303 = vmatpush.msra.mxu0 %v296_v1  ;;  %589 = vmatpush.msra.mxu2 %v296_v1  ;;  %v289_v8 = vld [vmem:[#allocation5 + $0x38] sm:$0xff]  ;;  %v288_v9 = vld [vmem:[#allocation5 + $0x30] sm:$0xff]  ;;  %v287_v10 = vld [vmem:[#allocation5 + $0x28] sm:$0xff]  ;;  %s801_s16 = sshra.s32 %s474_s7, 4  ;;  %s807_s24 = scalar_lea.hbm %s1094_s5, 32  ;;  %s802_s16 = int_to_ptr.hbm [resolvable:$true] %s801_s16 }
  0x33   : > { %v286_v11 = vld [vmem:[#allocation5 + $0x20] sm:$0xff]  ;;  %v285_v12 = vld [vmem:[#allocation5 + $0x18] sm:$0xff]  ;;  %v284_v13 = vld [vmem:[#allocation5 + $0x10] sm:$0xff]  ;;  %p808_p11 = scmp.lt.s32.totalorder %s802_s16, %s1094_s5 }
  0x34   : > { %304 = vmatpush.msra.mxu0 %v295_v2  ;;  %590 = vmatpush.msra.mxu2 %v295_v2  ;;  %v283_v14 = vld [vmem:[#allocation5 + $0x8] sm:$0xff]  ;;  %v282_v15 = vld [vmem:[#allocation5] sm:$0xff]  ;;  %v428_v18 = vld [vmem:[#allocation7 + $0x78] sm:$0xff] }
  0x35   : > { %v280_v16 = vld [vmem:[%s1006_s28] sm:$0xff]  ;;  %v281_v17 = vld [vmem:[%s1006_s28 + $0x8] sm:$0xff]  ;;  %433 = vmatpush.msra.mxu1 %v428_v18  ;;  %604 = vmatpush.msra.mxu3 %v428_v18  ;;  %s803_s28 = scalar_lea.hbm %s802_s16, 16 }
  0x36   : > { %305 = vmatpush.msra.mxu0 %v294_v3  ;;  %591 = vmatpush.msra.mxu2 %v294_v3  ;;  %v427_v19 = vld [vmem:[#allocation7 + $0x70] sm:$0xff]  ;;  %v426_v20 = vld [vmem:[#allocation7 + $0x68] sm:$0xff]  ;;  %v425_v21 = vld [vmem:[#allocation7 + $0x60] sm:$0xff]  ;;  %p804_p1 = scmp.ne.s32.totalorder %s802_s16, %s803_s28  ;;  %p809_p2 = scmp.lt.s32.totalorder %s807_s24, %s803_s28 }
  0x37   : > { %434 = vmatpush.msra.mxu1 %v427_v19  ;;  %605 = vmatpush.msra.mxu3 %v427_v19  ;;  %v691_v22 = vld [vmem:[%s1091_s2] ss:$0 sm:$0xff]  ;;  %v424_v23 = vld [vmem:[#allocation7 + $0x58] sm:$0xff]  ;;  %v423_v25 = vld [vmem:[#allocation7 + $0x50] sm:$0xff] }
  0x38   : > { %306 = vmatpush.msra.mxu0 %v293_v4  ;;  %592 = vmatpush.msra.mxu2 %v293_v4  ;;  %v422_v27 = vld [vmem:[#allocation7 + $0x48] sm:$0xff]  ;;  %v421_v29 = vld [vmem:[#allocation7 + $0x40] sm:$0xff]  ;;  %v420_v30 = vld [vmem:[#allocation7 + $0x38] sm:$0xff]  ;;  %p805_p4 = pnand %p804_p1, %p967_p3  ;;  %p810_p9 = por %p809_p2, %p808_p11 }
  0x39   : > { %435 = vmatpush.msra.mxu1 %v426_v20  ;;  %606 = vmatpush.msra.mxu3 %v426_v20  ;;  %v419_v33 = vld [vmem:[#allocation7 + $0x30] sm:$0xff]  ;;  %v418_v36 = vld [vmem:[#allocation7 + $0x28] sm:$0xff]  ;;  %v417_v39 = vld [vmem:[#allocation7 + $0x20] sm:$0xff] }
  0x3a   : > { %307 = vmatpush.msra.mxu0 %v292_v5  ;;  %593 = vmatpush.msra.mxu2 %v292_v5  ;;  %v416_v43 = vld [vmem:[#allocation7 + $0x18] sm:$0xff]  ;;  %v415_v47 = vld [vmem:[#allocation7 + $0x10] sm:$0xff]  ;;  %v414_v52 = vld [vmem:[#allocation7 + $0x8] sm:$0xff]  ;;  %p806_p8 = pneg %p805_p4 }
  0x3b   : > { %436 = vmatpush.msra.mxu1 %v425_v21  ;;  %607 = vmatpush.msra.mxu3 %v425_v21  ;;  %v413_v56 = vld [vmem:[#allocation7] sm:$0xff] }
  0x3c   : > { %308 = vmatpush.msra.mxu0 %v291_v6  ;;  %594 = vmatpush.msra.mxu2 %v291_v6  ;;  %p811_p10 = pnand %p810_p9, %p806_p8 }
  0x3d   : > { %437 = vmatpush.msra.mxu1 %v424_v23  ;;  %608 = vmatpush.msra.mxu3 %v424_v23 }
  0x3e   : > { %309 = vmatpush.msra.mxu0 %v290_v7  ;;  %595 = vmatpush.msra.mxu2 %v290_v7 }
  0x3f   : > { %438 = vmatpush.msra.mxu1 %v423_v25  ;;  %609 = vmatpush.msra.mxu3 %v423_v25 }
  0x40   : > { %310 = vmatpush.msra.mxu0 %v289_v8  ;;  %596 = vmatpush.msra.mxu2 %v289_v8 }
  0x41   : > { %439 = vmatpush.msra.mxu1 %v422_v27  ;;  %610 = vmatpush.msra.mxu3 %v422_v27 }
  0x42   : > { %311 = vmatpush.msra.mxu0 %v288_v9  ;;  %597 = vmatpush.msra.mxu2 %v288_v9 }
  0x43   : > { %440 = vmatpush.msra.mxu1 %v421_v29  ;;  %611 = vmatpush.msra.mxu3 %v421_v29 }
  0x44   : > { %312 = vmatpush.msra.mxu0 %v287_v10  ;;  %598 = vmatpush.msra.mxu2 %v287_v10 }
  0x45   : > { %441 = vmatpush.msra.mxu1 %v420_v30  ;;  %612 = vmatpush.msra.mxu3 %v420_v30 }
  0x46   : > { %313 = vmatpush.msra.mxu0 %v286_v11  ;;  %599 = vmatpush.msra.mxu2 %v286_v11 }
  0x47   : > { %442 = vmatpush.msra.mxu1 %v419_v33  ;;  %613 = vmatpush.msra.mxu3 %v419_v33 }
  0x48   : > { %314 = vmatpush.msra.mxu0 %v285_v12  ;;  %600 = vmatpush.msra.mxu2 %v285_v12 }
  0x49   : > { %443 = vmatpush.msra.mxu1 %v418_v36  ;;  %614 = vmatpush.msra.mxu3 %v418_v36 }
  0x4a   : > { %315 = vmatpush.msra.mxu0 %v284_v13  ;;  %601 = vmatpush.msra.mxu2 %v284_v13 }
  0x4b   : > { %444 = vmatpush.msra.mxu1 %v417_v39  ;;  %615 = vmatpush.msra.mxu3 %v417_v39 }
  0x4c   : > { %316 = vmatpush.msra.mxu0 %v283_v14  ;;  %602 = vmatpush.msra.mxu2 %v283_v14 }
  0x4d   : > { %445 = vmatpush.msra.mxu1 %v416_v43  ;;  %616 = vmatpush.msra.mxu3 %v416_v43 }
  0x4e   : > { %317 = vmatpush.msra.mxu0 %v282_v15  ;;  %603 = vmatpush.msra.mxu2 %v282_v15 }
  0x4f   : > { %318 = vmatmul.f32.vlgmr.msra.gmra.mxu0 %v280_v16  ;;  %321 = vmatmul.f32.vlgmr.msra.gmra.mxu2 %v281_v17 }
  0x50   : > { %446 = vmatpush.msra.mxu1 %v415_v47  ;;  %617 = vmatpush.msra.mxu3 %v415_v47 }
  0x52   : > { %447 = vmatpush.msra.mxu1 %v414_v52  ;;  %618 = vmatpush.msra.mxu3 %v414_v52 }
  0x54   : > { %448 = vmatpush.msra.mxu1 %v413_v56  ;;  %619 = vmatpush.msra.mxu3 %v413_v56 }
  0xcc   : > { %v319_v24 = vpop.f32.mrf.mxu0 }
  0xcd   : > { %v1021_v26 = vadd.f32 %v691_v22, %v319_v24 }
  0xcf   : > { %v1024_v28 = vmul.f32 0.70710677, %v1021_v26  ;;  %v325_v47 = vmul.f32 0.5, %v1021_v26 }
  0xd1   : > { %v329_v31 = vmul.f32 %v1024_v28, %v1024_v28 }
  0xd2   : > { %v322_v32 = vpop.f32.mrf.mxu2 }
  0xd3   : > { %v1028_v34 = vmin.f32 %v329_v31, 16.0  ;;  %v1030_v35 = vadd.f32 %v691_v22, %v322_v32 }
  0xd5   : > { %v331_v37 = vmul.f32 2.1237322e-06, %v1028_v34  ;;  %v1034_v38 = vmul.f32 0.70710677, %v1030_v35  ;;  %v342_v40 = vmul.f32 3.8918573e-05, %v1028_v34 }
  0xd7   : > { %v332_v41 = vadd.f32 0.00028619796, %v331_v37  ;;  %v369_v42 = vmul.f32 %v1034_v38, %v1034_v38  ;;  %v343_v44 = vadd.f32 0.001143296, %v342_v40 }
  0xd9   : > { %v333_v45 = vmul.f32 %v332_v41, %v1028_v34  ;;  %v370_v46 = vmin.f32 %v369_v42, 16.0  ;;  %v344_v48 = vmul.f32 %v343_v44, %v1028_v34 }
  0xdb   : > { %v371_v49 = vmul.f32 2.1237322e-06, %v370_v46  ;;  %v382_v50 = vmul.f32 3.8918573e-05, %v370_v46  ;;  %v334_v51 = vadd.f32 0.0036580483, %v333_v45 }
  0xdc   : > { %v345_v53 = vadd.f32 0.014752088, %v344_v48 }
  0xdd   : > { %v372_v54 = vadd.f32 0.00028619796, %v371_v49  ;;  %v383_v55 = vadd.f32 0.001143296, %v382_v50  ;;  %v335_v60 = vmul.f32 %v334_v51, %v1028_v34 }
  0xde   : > { %v346_v57 = vmul.f32 %v345_v53, %v1028_v34  ;;  %v326_v53 = vmul.f32 0.5, %v1030_v35 }
  0xdf   : > { %v373_v58 = vmul.f32 %v372_v54, %v370_v46  ;;  %v384_v59 = vmul.f32 %v383_v55, %v370_v46  ;;  %v336_v2 = vadd.f32 0.05243302, %v335_v60 }
  0xe0   : > { %v347_v61 = vadd.f32 0.112945676, %v346_v57 }
  0xe1   : > { %v374_v62 = vadd.f32 0.0036580483, %v373_v58  ;;  %v385_v63 = vadd.f32 0.014752088, %v384_v59  ;;  %v337_v8 = vmul.f32 %v336_v2, %v1028_v34 }
  0xe2   : > { %v348_v0 = vmul.f32 %v347_v61, %v1028_v34 }
  0xe3   : > { %v386_v1 = vmul.f32 %v385_v63, %v370_v46  ;;  %v375_v4 = vmul.f32 %v374_v62, %v370_v46  ;;  %v338_v13 = vadd.f32 0.18741608, %v337_v8 }
  0xe4   : > { %v349_v3 = vadd.f32 0.4994258, %v348_v0 }
  0xe5   : > { %v387_v5 = vadd.f32 0.112945676, %v386_v1  ;;  %v376_v10 = vadd.f32 0.05243302, %v375_v4  ;;  %v339_v17 = vmul.f32 %v338_v13, %v1028_v34 }
  0xe6   : > { %v350_v6 = vmul.f32 %v349_v3, %v1028_v34 }
  0xe7   : > { %v388_v7 = vmul.f32 %v387_v5, %v370_v46  ;;  %v377_v14 = vmul.f32 %v376_v10, %v370_v46  ;;  %v340_v21 = vadd.f32 1.1283791, %v339_v17 }
  0xe8   : > { %v351_v9 = vadd.f32 1.0, %v350_v6 }
  0xe9   : > { %v389_v11 = vadd.f32 0.4994258, %v388_v7  ;;  %v378_v18 = vadd.f32 0.18741608, %v377_v14  ;;  %v341_v31 = vmul.f32 %v340_v21, %v1024_v28 }
  0xea   : > { %693 = vrcp.f32 %v351_v9  ;;  %v363_v22 = vand.u32 2147483648, %v351_v9  ;;  %v361_v27 = vand.u32 2147483647, %v351_v9  ;;  %vm357_vm1 = vweird.f32 %v351_v9 }
  0xeb   : > { %v390_v12 = vmul.f32 %v389_v11, %v370_v46  ;;  %v379_v24 = vmul.f32 %v378_v18, %v370_v46 }
  0xec   : > { %v364_v32 = vor.u32 1.1754944e-38, %v363_v22  ;;  %vm362_vm3 = vcmp.eq.f32.partialorder %v361_v27, 8.507059e+37 }
  0xed   : > { %v391_v15 = vadd.f32 1.0, %v390_v12  ;;  %v380_v36 = vadd.f32 1.1283791, %v379_v24 }
  0xef   : > { %695 = vrcp.f32 %v391_v15  ;;  %v403_v37 = vand.u32 2147483648, %v391_v15  ;;  %v401_v41 = vand.u32 2147483647, %v391_v15  ;;  %vm397_vm5 = vweird.f32 %v391_v15 }
  0xf0   : > { %v694_v16 = vpop.eup %693  ;;  %v381_v46 = vmul.f32 %v380_v36, %v1034_v38  ;;  %v692_v38 = vld [vmem:[%s1093_s4] ss:$0 sm:$0xff] }
  0xf1   : > { %v353_v19 = vmul.f32 %v694_v16, %v351_v9  ;;  %vm358_vm0 = vweird.f32 %v694_v16  ;;  %v404_v45 = vor.u32 1.1754944e-38, %v403_v37  ;;  %vm402_vm7 = vcmp.eq.f32.partialorder %v401_v41, 8.507059e+37 }
  0xf2   : > { %vm359_vm2 = vmor %vm357_vm1, %vm358_vm0 }
  0xf3   : > { %v354_v20 = vsub.f32 1.0, %v353_v19 }
  0xf5   : > { %v696_v23 = vpop.eup %695  ;;  %v355_v25 = vmul.f32 %v694_v16, %v354_v20 }
  0xf6   : > { %v393_v29 = vmul.f32 %v696_v23, %v391_v15  ;;  %vm398_vm4 = vweird.f32 %v696_v23 }
  0xf7   : > { %v356_v30 = vadd.f32 %v694_v16, %v355_v25  ;;  %vm399_vm6 = vmor %vm397_vm5, %vm398_vm4 }
  0xf8   : > { %v394_v33 = vsub.f32 1.0, %v393_v29 }
  0xf9   : > { %v360_v34 = vsel %vm359_vm2, %v694_v16, %v356_v30 }
  0xfa   : > { %v365_v39 = vsel %vm362_vm3, %v364_v32, %v360_v34  ;;  %v395_v40 = vmul.f32 %v696_v23, %v394_v33 }
  0xfb   : > { %v366_v42 = vmul.f32 %v365_v39, %v341_v31 }
  0xfc   : > { %v396_v43 = vadd.f32 %v696_v23, %v395_v40 }
  0xfd   : > { %v579_v44 = vclamps-f32 %v366_v42, 1.0 }
  0xfe   : > { %v400_v28 = vsel %vm399_vm6, %v696_v23, %v396_v43 }
  0xff   : > { %v409_v48 = vadd.f32 1.0, %v579_v44  ;;  %v405_v49 = vsel %vm402_vm7, %v404_v45, %v400_v28 }
 0x100   : > { %v406_v50 = vmul.f32 %v405_v49, %v381_v46 }
 0x101   : > { %v411_v51 = vmul.f32 %v409_v48, %v325_v47 }
 0x102   : > { %v580_v52 = vclamps-f32 %v406_v50, 1.0 }
 0x103   : > { %449 = vmatmul.f32.vlgmr.msra.gmra.mxu1 %v411_v51 }
 0x104   : > { %v410_v54 = vadd.f32 1.0, %v580_v52 }
 0x106   : > { %v412_v55 = vmul.f32 %v410_v54, %v326_v53 }
 0x108   : > { %452 = vmatmul.f32.vlgmr.msra.gmra.mxu3 %v412_v55 }
 0x180   : > { %v450_v56 = vpop.f32.mrf.mxu1 }
 0x181   : > { %v451_v57 = vadd.f32 %v692_v38, %v450_v56 }
 0x183   : > { %456 = vst [vmem:[%s277_s13] sm:$0xff] %v451_v57 }
 0x18b   : > { %v453_v26 = vpop.f32.mrf.mxu3 }
 0x18c   : > { %v454_v35 = vadd.f32 %v692_v38, %v453_v26 }
 0x18e   : > { %457 = vst [vmem:[%s277_s13 + $0x8] sm:$0xff] %v454_v35 }
 0x18f   : > { %814 = shalt.err (!%p811_p10)
}
 0x190   : > { %s863_s8 = smov 128   ;;  %s864_s9 = smov 8  }
 0x191   : > { %630 = dma.vmem_to_hbm [thread:$0]  (%p967_p3), %s472_s6, 256, %s474_s7, %s459_s26, %s863_s8, %s863_s8, %s864_s9  }
 0x192 PF: > { %s488_s12 = sand.u32 1, %s845_s18   ;;  %p1102_p12 = scmp.ge.s32.totalorder %s857_s21, 2 }
 0x193   : > { %s489_s13 = scalar_lea.sflag [#allocation4], %s488_s12 }
 0x194   : > { %p644_p13 = pnand %p1102_p12, %p930_p6 }
 0x196   : > { %p645_p0 = pneg %p644_p13 }
 0x198   : > { %840 = dma.done.wait (%p645_p0), %s489_s13, 256  }
 0x199   : > { %842 = vsyncadd (%p645_p0), %s489_s13, 4294967040  ;;  %p19_p5 = scmp.ge.s32.totalorder %s957_s14, 4   ;;  %s1103_s18 = smov %s849_s19 }
 0x19a   : > { %s1104_s19 = smov %s853_s20  ;;  %s1105_s20 = smov %s973_s23 }
 0x19b   : > { %s1106_s21 = smov %s957_s14  ;;  %21 = sbr.rel (!%p19_p5) target bundleno = 6 (0x6), region = 93 }
 0x1a0   :  { %495 = vsyncpa [#allocation3], 1 }
 0x1a1   :  { %497 = vsyncpa [#allocation3 + $0x1], 1 }
 0x1a2   :  { %498 = vsyncpa [#allocation6], 1 }
 0x1a3   :  { %499 = vsyncpa [#allocation4], 1 }
 0x1a4   :  { %501 = vsyncpa [#allocation4 + $0x1], 1 }

</bundles_post_ra>
